<compile_context>
chip_gen: v5e
topology: v5e:2x2
jax: 0.10.0
libtpu: 0.0.40
codegen_flags: <defaults>
</compile_context>

<pallas_src>
import math

import jax
import jax.numpy as jnp
from jax import lax
from jax.experimental import pallas as pl
from jax.experimental.pallas import tpu as pltpu


def _make_attn_kernel(heads_per_block, logits_scale):
    """Kernel over one (head-block, key-tile) grid cell.

    Refs:
      q_ref  : (Hb, ch, L)   native dtype
      k_ref  : (Hb, ch, Tk)  native dtype
      v_ref  : (Hb, ch, Tk)  native dtype
      o_ref  : (Hb, ch, L)   output dtype
      m_ref  : (Hb, 1, L)    f32 running max
      l_ref  : (Hb, 1, L)    f32 running softmax denominator
      acc_ref: (Hb, ch, L)   f32 running (unnormalized) output
    """

    def kernel(q_ref, k_ref, v_ref, o_ref, m_ref, l_ref, acc_ref):
        kk = pl.program_id(1)

        @pl.when(kk == 0)
        def _init():
            m_ref[...] = jnp.full_like(m_ref, -jnp.inf)
            l_ref[...] = jnp.zeros_like(l_ref)
            acc_ref[...] = jnp.zeros_like(acc_ref)

        # heads_per_block is a static Python int -> this unrolls.  The per-head
        # matmuls hit the MXU one head at a time anyway (the contraction dim is
        # ch), so batching them into one dot would not change the MXU work.
        for h in range(heads_per_block):
            q = q_ref[h]          # (ch, L)   native dtype
            k = k_ref[h]          # (ch, Tk)  native dtype
            v = v_ref[h]          # (ch, Tk)  native dtype

            # s[s_kv, t] = sum_c k[c, s_kv] * q[c, t]
            # trans-lhs contraction fed to the MXU directly (no materialized
            # transpose); accumulate in f32, fold scale^2 = 1/sqrt(ch) once.
            s = lax.dot_general(
                k, q,
                dimension_numbers=(((0,), (0,)), ((), ())),
                preferred_element_type=jnp.float32,
            ) * logits_scale                                    # (Tk, L) f32

            m_prev = m_ref[h]                                   # (1, L)
            m_new = jnp.maximum(m_prev, jnp.max(s, axis=0, keepdims=True))
            alpha = jnp.exp(m_prev - m_new)                     # (1, L)
            p = jnp.exp(s - m_new)                              # (Tk, L) f32 (EUP)

            l_ref[h] = alpha * l_ref[h] + jnp.sum(p, axis=0, keepdims=True)

            # pv[c, t] = sum_s v[c, s] * p[s, t]  -- canonical MXU matmul.
            # p is cast back to the input dtype (mirrors the reference's
            # softmax(...).type(weight.dtype) before the second einsum).
            pv = lax.dot_general(
                v, p.astype(v.dtype),
                dimension_numbers=(((1,), (0,)), ((), ())),
                preferred_element_type=jnp.float32,
            )                                                   # (ch, L) f32

            acc_ref[h] = alpha * acc_ref[h] + pv
            m_ref[h] = m_new

        @pl.when(kk == pl.num_programs(1) - 1)
        def _finalize():
            inv_l = pl.reciprocal(l_ref[...], approx=True)      # (Hb, 1, L), EUP
            o_ref[...] = (acc_ref[...] * inv_l).astype(o_ref.dtype)

    return kernel


def _choose_kv_tile(length):
    # Key tiles must be a multiple of 128 lanes (or the full length).
    if length % 128 != 0:
        return length            # full-length fallback (see TODO at top)
    for cand in (512, 256, 128):
        if cand <= length and length % cand == 0:
            return cand
    return length


def _choose_heads_per_block(B, ch, length, kv_tile, itemsize,
                            budget_bytes=12 * 1024 * 1024):
    """Largest divisor of B whose estimated VMEM working set fits the budget."""

    def footprint(hb):
        logits = 2 * hb * kv_tile * length * 4                     # s + p (f32)
        io = 2 * hb * ch * (2 * length + 2 * kv_tile) * itemsize   # dbl-buffered q,o,k,v
        scratch = hb * (ch + 2) * length * 4                       # acc, m, l
        return logits + io + scratch

    best = 1
    for cand in range(1, B + 1):
        if B % cand == 0 and footprint(cand) <= budget_bytes:
            best = cand
    return best


def qkv_attention(qkv, n_heads, *, kv_tile=None, heads_per_block=None,
                  vmem_limit_bytes=48 * 1024 * 1024):
    """JAX/Pallas equivalent of QKVAttention.forward.

    qkv: (bs, 3 * n_heads * ch, length)
         NOTE: assumes the fused projection emits channels as
         [head][q(ch), k(ch), v(ch)], matching the reference .split(ch, dim=1).
    returns: (bs, n_heads * ch, length)
    """
    bs, width, length = qkv.shape
    assert width % (3 * n_heads) == 0
    ch = width // (3 * n_heads)
    B = bs * n_heads

    # Pure metadata reshape -> (B, 3, ch, L); no q/k/v copies in HBM.
    qkv_r = qkv.reshape(B, 3, ch, length)

    if kv_tile is None:
        kv_tile = _choose_kv_tile(length)
    assert length % kv_tile == 0
    assert kv_tile == length or kv_tile % 128 == 0

    if heads_per_block is None:
        heads_per_block = _choose_heads_per_block(
            B, ch, length, kv_tile, qkv.dtype.itemsize)
    assert B % heads_per_block == 0
    hb = heads_per_block
    num_kv = length // kv_tile

    logits_scale = 1.0 / math.sqrt(ch)   # (1/ch**0.25)**2 folded into f32 logits
    kernel = _make_attn_kernel(hb, logits_scale)

    # Same array bound three times; dim 1 (squeezed) selects the q/k/v slab.
    q_spec = pl.BlockSpec((hb, None, ch, length), lambda b, s: (b, 0, 0, 0))
    k_spec = pl.BlockSpec((hb, None, ch, kv_tile), lambda b, s: (b, 1, 0, s))
    v_spec = pl.BlockSpec((hb, None, ch, kv_tile), lambda b, s: (b, 2, 0, s))
    o_spec = pl.BlockSpec((hb, ch, length), lambda b, s: (b, 0, 0))

    out = pl.pallas_call(
        kernel,
        out_shape=jax.ShapeDtypeStruct((B, ch, length), qkv.dtype),
        grid_spec=pltpu.PrefetchScalarGridSpec(
            num_scalar_prefetch=0,
            grid=(B // hb, num_kv),
            in_specs=[q_spec, k_spec, v_spec],
            out_specs=o_spec,
            scratch_shapes=[
                pltpu.VMEM((hb, 1, length), jnp.float32),    # running max
                pltpu.VMEM((hb, 1, length), jnp.float32),    # running denom
                pltpu.VMEM((hb, ch, length), jnp.float32),   # accumulator
            ],
        ),
        compiler_params=pltpu.CompilerParams(
            dimension_semantics=("parallel", "arbitrary"),
            vmem_limit_bytes=vmem_limit_bytes,
        ),
    )(qkv_r, qkv_r, qkv_r)

    return out.reshape(bs, n_heads * ch, length)


def qkv_attention_ref(qkv, n_heads):
    """Pure-JAX reference mirroring the PyTorch forward exactly."""
    bs, width, length = qkv.shape
    ch = width // (3 * n_heads)
    qkv_r = qkv.reshape(bs * n_heads, 3 * ch, length)
    q, k, v = qkv_r[:, :ch], qkv_r[:, ch:2 * ch], qkv_r[:, 2 * ch:]
    scale = 1.0 / math.sqrt(math.sqrt(ch))
    w = jnp.einsum("bct,bcs->bts", q * scale, k * scale)
    w = jax.nn.softmax(w.astype(jnp.float32), axis=-1).astype(w.dtype)
    a = jnp.einsum("bts,bcs->bct", w, v)
    return a.reshape(bs, -1, length)


if __name__ == "__main__":
    key = jax.random.PRNGKey(0)
    k1, k2 = jax.random.split(key)

    # Tolerances: the final softmax normalization uses the EUP approximate
    # reciprocal (per perf guidance), so allow a small relative slack.
    ATOL = RTOL = 5e-3

    # Case 1: small, module-consistent shapes (single kv tile, all heads in
    # one grid step): bs=2, n_heads=2, ch=8, length=16 -> qkv (2, 96, 16).
    bs, n_heads, ch, length = 2, 2, 8, 16
    qkv = jax.random.normal(k1, (bs, 3 * n_heads * ch, length), dtype=jnp.float32)
    out = jax.block_until_ready(qkv_attention(qkv, n_heads))
    ref = qkv_attention_ref(qkv, n_heads)
    assert out.shape == (bs, n_heads * ch, length), out.shape
    assert jnp.allclose(out, ref, atol=ATOL, rtol=RTOL), "mismatch vs reference (case 1)"

    # Case 2: exercises the multi-tile online-softmax path (length=256,
    # kv_tile=128 -> 2 key tiles) with 2 heads batched per grid step.
    bs2, n_heads2, ch2, length2 = 1, 2, 32, 256
    qkv2 = jax.random.normal(k2, (bs2, 3 * n_heads2 * ch2, length2), dtype=jnp.float32)
    out2 = jax.block_until_ready(qkv_attention(qkv2, n_heads2, kv_tile=128))
    ref2 = qkv_attention_ref(qkv2, n_heads2)
    assert out2.shape == (bs2, n_heads2 * ch2, length2), out2.shape
    assert jnp.allclose(out2, ref2, atol=ATOL, rtol=RTOL), "mismatch vs reference (case 2)"

    print("KERNEL_OK")
</pallas_src>

<mosaic_0001>
module attributes {stable_mosaic.version = 11 : i64} {
  func.func @kernel(%arg0: i32, %arg1: i32, %arg2: memref<4x1x8x16xf32, #tpu.memory_space<vmem>>, %arg3: memref<4x1x8x16xf32, #tpu.memory_space<vmem>>, %arg4: memref<4x1x8x16xf32, #tpu.memory_space<vmem>>, %arg5: memref<4x8x16xf32, #tpu.memory_space<vmem>>, %arg6: memref<4x1x16xf32, #tpu.memory_space<vmem>>, %arg7: memref<4x1x16xf32, #tpu.memory_space<vmem>>, %arg8: memref<4x8x16xf32, #tpu.memory_space<vmem>>) attributes {dimension_semantics = [#tpu.dimension_semantics<parallel>, #tpu.dimension_semantics<arbitrary>], iteration_bounds = array<i64: 1, 1>, scalar_prefetch = 0 : i64, scratch_operands = 3 : i64, tpu.core_type = #tpu.core_type<tc>, window_params = [{transform_indices = @transform_0, window_bounds = array<i64: 4, 1, 8, 16>}, {transform_indices = @transform_1, window_bounds = array<i64: 4, 1, 8, 16>}, {transform_indices = @transform_2, window_bounds = array<i64: 4, 1, 8, 16>}, {transform_indices = @transform_3, window_bounds = array<i64: 4, 8, 16>}]} {
    %c0_i32 = arith.constant 0 : i32
    %0 = arith.cmpi eq, %arg1, %c0_i32 : i32
    %1 = arith.extui %0 : i1 to i32
    %c0_i32_0 = arith.constant 0 : i32
    %2 = arith.cmpi ne, %1, %c0_i32_0 : i32
    scf.if %2 {
      %cst_138 = arith.constant 0xFF800000 : f32
      %166 = vector.broadcast %cst_138 : f32 to vector<4x1x16xf32>
      %c0_139 = arith.constant 0 : index
      %c0_140 = arith.constant 0 : index
      %c0_141 = arith.constant 0 : index
      %167 = vector.load %arg6[%c0_139, %c0_140, %c0_141] : memref<4x1x16xf32, #tpu.memory_space<vmem>>, vector<4x1x16xf32>
      tpu.vector_store %arg6[%c0_139, %c0_140, %c0_141], %166 {strides = array<i32>} : memref<4x1x16xf32, #tpu.memory_space<vmem>>, vector<4x1x16xf32>,
      %cst_142 = arith.constant 0.000000e+00 : f32
      %168 = vector.broadcast %cst_142 : f32 to vector<4x1x16xf32>
      %c0_143 = arith.constant 0 : index
      %c0_144 = arith.constant 0 : index
      %c0_145 = arith.constant 0 : index
      %169 = vector.load %arg7[%c0_143, %c0_144, %c0_145] : memref<4x1x16xf32, #tpu.memory_space<vmem>>, vector<4x1x16xf32>
      tpu.vector_store %arg7[%c0_143, %c0_144, %c0_145], %168 {strides = array<i32>} : memref<4x1x16xf32, #tpu.memory_space<vmem>>, vector<4x1x16xf32>,
      %cst_146 = arith.constant 0.000000e+00 : f32
      %170 = vector.broadcast %cst_146 : f32 to vector<4x8x16xf32>
      %c0_147 = arith.constant 0 : index
      %c0_148 = arith.constant 0 : index
      %c0_149 = arith.constant 0 : index
      %171 = vector.load %arg8[%c0_147, %c0_148, %c0_149] : memref<4x8x16xf32, #tpu.memory_space<vmem>>, vector<4x8x16xf32>
      tpu.vector_store %arg8[%c0_147, %c0_148, %c0_149], %170 {strides = array<i32>} : memref<4x8x16xf32, #tpu.memory_space<vmem>>, vector<4x8x16xf32>,
    } else {
    }
    %c0 = arith.constant 0 : index
    %c0_1 = arith.constant 0 : index
    %c0_2 = arith.constant 0 : index
    %c0_3 = arith.constant 0 : index
    %3 = vector.load %arg2[%c0, %c0_1, %c0_2, %c0_3] : memref<4x1x8x16xf32, #tpu.memory_space<vmem>>, vector<1x1x8x16xf32>
    %4 = vector.shape_cast %3 : vector<1x1x8x16xf32> to vector<8x16xf32>
    %c0_4 = arith.constant 0 : index
    %c0_5 = arith.constant 0 : index
    %c0_6 = arith.constant 0 : index
    %c0_7 = arith.constant 0 : index
    %5 = vector.load %arg3[%c0_4, %c0_5, %c0_6, %c0_7] : memref<4x1x8x16xf32, #tpu.memory_space<vmem>>, vector<1x1x8x16xf32>
    %6 = vector.shape_cast %5 : vector<1x1x8x16xf32> to vector<8x16xf32>
    %c0_8 = arith.constant 0 : index
    %c0_9 = arith.constant 0 : index
    %c0_10 = arith.constant 0 : index
    %c0_11 = arith.constant 0 : index
    %7 = vector.load %arg4[%c0_8, %c0_9, %c0_10, %c0_11] : memref<4x1x8x16xf32, #tpu.memory_space<vmem>>, vector<1x1x8x16xf32>
    %8 = vector.shape_cast %7 : vector<1x1x8x16xf32> to vector<8x16xf32>
    %cst = arith.constant dense<0.000000e+00> : vector<16x16xf32>
    %9 = tpu.matmul %6, %4, %cst {dimension_numbers = #tpu.dot_dimension_numbers<[0], [0], [1], [1], [0, 1, 1, 1], [], []>} : vector<8x16xf32>, vector<8x16xf32>, vector<16x16xf32> -> vector<16x16xf32>
    %cst_12 = arith.constant 0.353553385 : f32
    %10 = vector.broadcast %cst_12 : f32 to vector<16x16xf32>
    %11 = arith.mulf %9, %10 : vector<16x16xf32>
    %c0_13 = arith.constant 0 : index
    %c0_14 = arith.constant 0 : index
    %c0_15 = arith.constant 0 : index
    %12 = vector.load %arg6[%c0_13, %c0_14, %c0_15] : memref<4x1x16xf32, #tpu.memory_space<vmem>>, vector<1x1x16xf32>
    %13 = vector.shape_cast %12 : vector<1x1x16xf32> to vector<1x16xf32>
    %cst_16 = arith.constant dense<0xFF800000> : vector<16xf32>
    %14 = vector.multi_reduction <maximumf>, %11, %cst_16 [0] : vector<16x16xf32> to vector<16xf32>
    %15 = vector.shape_cast %14 : vector<16xf32> to vector<1x16xf32>
    %16 = arith.maximumf %13, %15 : vector<1x16xf32>
    %17 = arith.subf %13, %16 : vector<1x16xf32>
    %18 = math.exp %17 : vector<1x16xf32>
    %19 = vector.broadcast %16 : vector<1x16xf32> to vector<16x16xf32>
    %20 = arith.subf %11, %19 : vector<16x16xf32>
    %21 = math.exp %20 : vector<16x16xf32>
    %c0_17 = arith.constant 0 : index
    %c0_18 = arith.constant 0 : index
    %c0_19 = arith.constant 0 : index
    %22 = vector.load %arg7[%c0_17, %c0_18, %c0_19] : memref<4x1x16xf32, #tpu.memory_space<vmem>>, vector<1x1x16xf32>
    %23 = vector.shape_cast %22 : vector<1x1x16xf32> to vector<1x16xf32>
    %24 = arith.mulf %18, %23 : vector<1x16xf32>
    %cst_20 = arith.constant dense<0.000000e+00> : vector<16xf32>
    %25 = vector.multi_reduction <add>, %21, %cst_20 [0] : vector<16x16xf32> to vector<16xf32>
    %26 = vector.shape_cast %25 : vector<16xf32> to vector<1x16xf32>
    %27 = arith.addf %24, %26 : vector<1x16xf32>
    %c0_21 = arith.constant 0 : index
    %c0_22 = arith.constant 0 : index
    %c0_23 = arith.constant 0 : index
    %28 = vector.load %arg7[%c0_21, %c0_22, %c0_23] : memref<4x1x16xf32, #tpu.memory_space<vmem>>, vector<1x1x16xf32>
    %29 = vector.shape_cast %28 : vector<1x1x16xf32> to vector<1x16xf32>
    %30 = vector.shape_cast %27 : vector<1x16xf32> to vector<1x1x16xf32>
    tpu.vector_store %arg7[%c0_21, %c0_22, %c0_23], %30 {strides = array<i32>} : memref<4x1x16xf32, #tpu.memory_space<vmem>>, vector<1x1x16xf32>,
    %cst_24 = arith.constant dense<0.000000e+00> : vector<8x16xf32>
    %31 = tpu.matmul %8, %21, %cst_24 {dimension_numbers = #tpu.dot_dimension_numbers<[1], [0], [0], [1], [0, 0, 1, 1], [], []>} : vector<8x16xf32>, vector<16x16xf32>, vector<8x16xf32> -> vector<8x16xf32>
    %c0_25 = arith.constant 0 : index
    %c0_26 = arith.constant 0 : index
    %c0_27 = arith.constant 0 : index
    %32 = vector.load %arg8[%c0_25, %c0_26, %c0_27] : memref<4x8x16xf32, #tpu.memory_space<vmem>>, vector<1x8x16xf32>
    %33 = vector.shape_cast %32 : vector<1x8x16xf32> to vector<8x16xf32>
    %34 = vector.broadcast %18 : vector<1x16xf32> to vector<8x16xf32>
    %35 = arith.mulf %34, %33 : vector<8x16xf32>
    %36 = arith.addf %35, %31 : vector<8x16xf32>
    %c0_28 = arith.constant 0 : index
    %c0_29 = arith.constant 0 : index
    %c0_30 = arith.constant 0 : index
    %37 = vector.load %arg8[%c0_28, %c0_29, %c0_30] : memref<4x8x16xf32, #tpu.memory_space<vmem>>, vector<1x8x16xf32>
    %38 = vector.shape_cast %37 : vector<1x8x16xf32> to vector<8x16xf32>
    %39 = vector.shape_cast %36 : vector<8x16xf32> to vector<1x8x16xf32>
    tpu.vector_store %arg8[%c0_28, %c0_29, %c0_30], %39 {strides = array<i32>} : memref<4x8x16xf32, #tpu.memory_space<vmem>>, vector<1x8x16xf32>,
    %c0_31 = arith.constant 0 : index
    %c0_32 = arith.constant 0 : index
    %c0_33 = arith.constant 0 : index
    %40 = vector.load %arg6[%c0_31, %c0_32, %c0_33] : memref<4x1x16xf32, #tpu.memory_space<vmem>>, vector<1x1x16xf32>
    %41 = vector.shape_cast %40 : vector<1x1x16xf32> to vector<1x16xf32>
    %42 = vector.shape_cast %16 : vector<1x16xf32> to vector<1x1x16xf32>
    tpu.vector_store %arg6[%c0_31, %c0_32, %c0_33], %42 {strides = array<i32>} : memref<4x1x16xf32, #tpu.memory_space<vmem>>, vector<1x1x16xf32>,
    %c1 = arith.constant 1 : index
    %c0_34 = arith.constant 0 : index
    %c0_35 = arith.constant 0 : index
    %c0_36 = arith.constant 0 : index
    %43 = vector.load %arg2[%c1, %c0_34, %c0_35, %c0_36] : memref<4x1x8x16xf32, #tpu.memory_space<vmem>>, vector<1x1x8x16xf32>
    %44 = vector.shape_cast %43 : vector<1x1x8x16xf32> to vector<8x16xf32>
    %c1_37 = arith.constant 1 : index
    %c0_38 = arith.constant 0 : index
    %c0_39 = arith.constant 0 : index
    %c0_40 = arith.constant 0 : index
    %45 = vector.load %arg3[%c1_37, %c0_38, %c0_39, %c0_40] : memref<4x1x8x16xf32, #tpu.memory_space<vmem>>, vector<1x1x8x16xf32>
    %46 = vector.shape_cast %45 : vector<1x1x8x16xf32> to vector<8x16xf32>
    %c1_41 = arith.constant 1 : index
    %c0_42 = arith.constant 0 : index
    %c0_43 = arith.constant 0 : index
    %c0_44 = arith.constant 0 : index
    %47 = vector.load %arg4[%c1_41, %c0_42, %c0_43, %c0_44] : memref<4x1x8x16xf32, #tpu.memory_space<vmem>>, vector<1x1x8x16xf32>
    %48 = vector.shape_cast %47 : vector<1x1x8x16xf32> to vector<8x16xf32>
    %cst_45 = arith.constant dense<0.000000e+00> : vector<16x16xf32>
    %49 = tpu.matmul %46, %44, %cst_45 {dimension_numbers = #tpu.dot_dimension_numbers<[0], [0], [1], [1], [0, 1, 1, 1], [], []>} : vector<8x16xf32>, vector<8x16xf32>, vector<16x16xf32> -> vector<16x16xf32>
    %cst_46 = arith.constant 0.353553385 : f32
    %50 = vector.broadcast %cst_46 : f32 to vector<16x16xf32>
    %51 = arith.mulf %49, %50 : vector<16x16xf32>
    %c1_47 = arith.constant 1 : index
    %c0_48 = arith.constant 0 : index
    %c0_49 = arith.constant 0 : index
    %52 = vector.load %arg6[%c1_47, %c0_48, %c0_49] : memref<4x1x16xf32, #tpu.memory_space<vmem>>, vector<1x1x16xf32>
    %53 = vector.shape_cast %52 : vector<1x1x16xf32> to vector<1x16xf32>
    %cst_50 = arith.constant dense<0xFF800000> : vector<16xf32>
    %54 = vector.multi_reduction <maximumf>, %51, %cst_50 [0] : vector<16x16xf32> to vector<16xf32>
    %55 = vector.shape_cast %54 : vector<16xf32> to vector<1x16xf32>
    %56 = arith.maximumf %53, %55 : vector<1x16xf32>
    %57 = arith.subf %53, %56 : vector<1x16xf32>
    %58 = math.exp %57 : vector<1x16xf32>
    %59 = vector.broadcast %56 : vector<1x16xf32> to vector<16x16xf32>
    %60 = arith.subf %51, %59 : vector<16x16xf32>
    %61 = math.exp %60 : vector<16x16xf32>
    %c1_51 = arith.constant 1 : index
    %c0_52 = arith.constant 0 : index
    %c0_53 = arith.constant 0 : index
    %62 = vector.load %arg7[%c1_51, %c0_52, %c0_53] : memref<4x1x16xf32, #tpu.memory_space<vmem>>, vector<1x1x16xf32>
    %63 = vector.shape_cast %62 : vector<1x1x16xf32> to vector<1x16xf32>
    %64 = arith.mulf %58, %63 : vector<1x16xf32>
    %cst_54 = arith.constant dense<0.000000e+00> : vector<16xf32>
    %65 = vector.multi_reduction <add>, %61, %cst_54 [0] : vector<16x16xf32> to vector<16xf32>
    %66 = vector.shape_cast %65 : vector<16xf32> to vector<1x16xf32>
    %67 = arith.addf %64, %66 : vector<1x16xf32>
    %c1_55 = arith.constant 1 : index
    %c0_56 = arith.constant 0 : index
    %c0_57 = arith.constant 0 : index
    %68 = vector.load %arg7[%c1_55, %c0_56, %c0_57] : memref<4x1x16xf32, #tpu.memory_space<vmem>>, vector<1x1x16xf32>
    %69 = vector.shape_cast %68 : vector<1x1x16xf32> to vector<1x16xf32>
    %70 = vector.shape_cast %67 : vector<1x16xf32> to vector<1x1x16xf32>
    tpu.vector_store %arg7[%c1_55, %c0_56, %c0_57], %70 {strides = array<i32>} : memref<4x1x16xf32, #tpu.memory_space<vmem>>, vector<1x1x16xf32>,
    %cst_58 = arith.constant dense<0.000000e+00> : vector<8x16xf32>
    %71 = tpu.matmul %48, %61, %cst_58 {dimension_numbers = #tpu.dot_dimension_numbers<[1], [0], [0], [1], [0, 0, 1, 1], [], []>} : vector<8x16xf32>, vector<16x16xf32>, vector<8x16xf32> -> vector<8x16xf32>
    %c1_59 = arith.constant 1 : index
    %c0_60 = arith.constant 0 : index
    %c0_61 = arith.constant 0 : index
    %72 = vector.load %arg8[%c1_59, %c0_60, %c0_61] : memref<4x8x16xf32, #tpu.memory_space<vmem>>, vector<1x8x16xf32>
    %73 = vector.shape_cast %72 : vector<1x8x16xf32> to vector<8x16xf32>
    %74 = vector.broadcast %58 : vector<1x16xf32> to vector<8x16xf32>
    %75 = arith.mulf %74, %73 : vector<8x16xf32>
    %76 = arith.addf %75, %71 : vector<8x16xf32>
    %c1_62 = arith.constant 1 : index
    %c0_63 = arith.constant 0 : index
    %c0_64 = arith.constant 0 : index
    %77 = vector.load %arg8[%c1_62, %c0_63, %c0_64] : memref<4x8x16xf32, #tpu.memory_space<vmem>>, vector<1x8x16xf32>
    %78 = vector.shape_cast %77 : vector<1x8x16xf32> to vector<8x16xf32>
    %79 = vector.shape_cast %76 : vector<8x16xf32> to vector<1x8x16xf32>
    tpu.vector_store %arg8[%c1_62, %c0_63, %c0_64], %79 {strides = array<i32>} : memref<4x8x16xf32, #tpu.memory_space<vmem>>, vector<1x8x16xf32>,
    %c1_65 = arith.constant 1 : index
    %c0_66 = arith.constant 0 : index
    %c0_67 = arith.constant 0 : index
    %80 = vector.load %arg6[%c1_65, %c0_66, %c0_67] : memref<4x1x16xf32, #tpu.memory_space<vmem>>, vector<1x1x16xf32>
    %81 = vector.shape_cast %80 : vector<1x1x16xf32> to vector<1x16xf32>
    %82 = vector.shape_cast %56 : vector<1x16xf32> to vector<1x1x16xf32>
    tpu.vector_store %arg6[%c1_65, %c0_66, %c0_67], %82 {strides = array<i32>} : memref<4x1x16xf32, #tpu.memory_space<vmem>>, vector<1x1x16xf32>,
    %c2 = arith.constant 2 : index
    %c0_68 = arith.constant 0 : index
    %c0_69 = arith.constant 0 : index
    %c0_70 = arith.constant 0 : index
    %83 = vector.load %arg2[%c2, %c0_68, %c0_69, %c0_70] : memref<4x1x8x16xf32, #tpu.memory_space<vmem>>, vector<1x1x8x16xf32>
    %84 = vector.shape_cast %83 : vector<1x1x8x16xf32> to vector<8x16xf32>
    %c2_71 = arith.constant 2 : index
    %c0_72 = arith.constant 0 : index
    %c0_73 = arith.constant 0 : index
    %c0_74 = arith.constant 0 : index
    %85 = vector.load %arg3[%c2_71, %c0_72, %c0_73, %c0_74] : memref<4x1x8x16xf32, #tpu.memory_space<vmem>>, vector<1x1x8x16xf32>
    %86 = vector.shape_cast %85 : vector<1x1x8x16xf32> to vector<8x16xf32>
    %c2_75 = arith.constant 2 : index
    %c0_76 = arith.constant 0 : index
    %c0_77 = arith.constant 0 : index
    %c0_78 = arith.constant 0 : index
    %87 = vector.load %arg4[%c2_75, %c0_76, %c0_77, %c0_78] : memref<4x1x8x16xf32, #tpu.memory_space<vmem>>, vector<1x1x8x16xf32>
    %88 = vector.shape_cast %87 : vector<1x1x8x16xf32> to vector<8x16xf32>
    %cst_79 = arith.constant dense<0.000000e+00> : vector<16x16xf32>
    %89 = tpu.matmul %86, %84, %cst_79 {dimension_numbers = #tpu.dot_dimension_numbers<[0], [0], [1], [1], [0, 1, 1, 1], [], []>} : vector<8x16xf32>, vector<8x16xf32>, vector<16x16xf32> -> vector<16x16xf32>
    %cst_80 = arith.constant 0.353553385 : f32
    %90 = vector.broadcast %cst_80 : f32 to vector<16x16xf32>
    %91 = arith.mulf %89, %90 : vector<16x16xf32>
    %c2_81 = arith.constant 2 : index
    %c0_82 = arith.constant 0 : index
    %c0_83 = arith.constant 0 : index
    %92 = vector.load %arg6[%c2_81, %c0_82, %c0_83] : memref<4x1x16xf32, #tpu.memory_space<vmem>>, vector<1x1x16xf32>
    %93 = vector.shape_cast %92 : vector<1x1x16xf32> to vector<1x16xf32>
    %cst_84 = arith.constant dense<0xFF800000> : vector<16xf32>
    %94 = vector.multi_reduction <maximumf>, %91, %cst_84 [0] : vector<16x16xf32> to vector<16xf32>
    %95 = vector.shape_cast %94 : vector<16xf32> to vector<1x16xf32>
    %96 = arith.maximumf %93, %95 : vector<1x16xf32>
    %97 = arith.subf %93, %96 : vector<1x16xf32>
    %98 = math.exp %97 : vector<1x16xf32>
    %99 = vector.broadcast %96 : vector<1x16xf32> to vector<16x16xf32>
    %100 = arith.subf %91, %99 : vector<16x16xf32>
    %101 = math.exp %100 : vector<16x16xf32>
    %c2_85 = arith.constant 2 : index
    %c0_86 = arith.constant 0 : index
    %c0_87 = arith.constant 0 : index
    %102 = vector.load %arg7[%c2_85, %c0_86, %c0_87] : memref<4x1x16xf32, #tpu.memory_space<vmem>>, vector<1x1x16xf32>
    %103 = vector.shape_cast %102 : vector<1x1x16xf32> to vector<1x16xf32>
    %104 = arith.mulf %98, %103 : vector<1x16xf32>
    %cst_88 = arith.constant dense<0.000000e+00> : vector<16xf32>
    %105 = vector.multi_reduction <add>, %101, %cst_88 [0] : vector<16x16xf32> to vector<16xf32>
    %106 = vector.shape_cast %105 : vector<16xf32> to vector<1x16xf32>
    %107 = arith.addf %104, %106 : vector<1x16xf32>
    %c2_89 = arith.constant 2 : index
    %c0_90 = arith.constant 0 : index
    %c0_91 = arith.constant 0 : index
    %108 = vector.load %arg7[%c2_89, %c0_90, %c0_91] : memref<4x1x16xf32, #tpu.memory_space<vmem>>, vector<1x1x16xf32>
    %109 = vector.shape_cast %108 : vector<1x1x16xf32> to vector<1x16xf32>
    %110 = vector.shape_cast %107 : vector<1x16xf32> to vector<1x1x16xf32>
    tpu.vector_store %arg7[%c2_89, %c0_90, %c0_91], %110 {strides = array<i32>} : memref<4x1x16xf32, #tpu.memory_space<vmem>>, vector<1x1x16xf32>,
    %cst_92 = arith.constant dense<0.000000e+00> : vector<8x16xf32>
    %111 = tpu.matmul %88, %101, %cst_92 {dimension_numbers = #tpu.dot_dimension_numbers<[1], [0], [0], [1], [0, 0, 1, 1], [], []>} : vector<8x16xf32>, vector<16x16xf32>, vector<8x16xf32> -> vector<8x16xf32>
    %c2_93 = arith.constant 2 : index
    %c0_94 = arith.constant 0 : index
    %c0_95 = arith.constant 0 : index
    %112 = vector.load %arg8[%c2_93, %c0_94, %c0_95] : memref<4x8x16xf32, #tpu.memory_space<vmem>>, vector<1x8x16xf32>
    %113 = vector.shape_cast %112 : vector<1x8x16xf32> to vector<8x16xf32>
    %114 = vector.broadcast %98 : vector<1x16xf32> to vector<8x16xf32>
    %115 = arith.mulf %114, %113 : vector<8x16xf32>
    %116 = arith.addf %115, %111 : vector<8x16xf32>
    %c2_96 = arith.constant 2 : index
    %c0_97 = arith.constant 0 : index
    %c0_98 = arith.constant 0 : index
    %117 = vector.load %arg8[%c2_96, %c0_97, %c0_98] : memref<4x8x16xf32, #tpu.memory_space<vmem>>, vector<1x8x16xf32>
    %118 = vector.shape_cast %117 : vector<1x8x16xf32> to vector<8x16xf32>
    %119 = vector.shape_cast %116 : vector<8x16xf32> to vector<1x8x16xf32>
    tpu.vector_store %arg8[%c2_96, %c0_97, %c0_98], %119 {strides = array<i32>} : memref<4x8x16xf32, #tpu.memory_space<vmem>>, vector<1x8x16xf32>,
    %c2_99 = arith.constant 2 : index
    %c0_100 = arith.constant 0 : index
    %c0_101 = arith.constant 0 : index
    %120 = vector.load %arg6[%c2_99, %c0_100, %c0_101] : memref<4x1x16xf32, #tpu.memory_space<vmem>>, vector<1x1x16xf32>
    %121 = vector.shape_cast %120 : vector<1x1x16xf32> to vector<1x16xf32>
    %122 = vector.shape_cast %96 : vector<1x16xf32> to vector<1x1x16xf32>
    tpu.vector_store %arg6[%c2_99, %c0_100, %c0_101], %122 {strides = array<i32>} : memref<4x1x16xf32, #tpu.memory_space<vmem>>, vector<1x1x16xf32>,
    %c3 = arith.constant 3 : index
    %c0_102 = arith.constant 0 : index
    %c0_103 = arith.constant 0 : index
    %c0_104 = arith.constant 0 : index
    %123 = vector.load %arg2[%c3, %c0_102, %c0_103, %c0_104] : memref<4x1x8x16xf32, #tpu.memory_space<vmem>>, vector<1x1x8x16xf32>
    %124 = vector.shape_cast %123 : vector<1x1x8x16xf32> to vector<8x16xf32>
    %c3_105 = arith.constant 3 : index
    %c0_106 = arith.constant 0 : index
    %c0_107 = arith.constant 0 : index
    %c0_108 = arith.constant 0 : index
    %125 = vector.load %arg3[%c3_105, %c0_106, %c0_107, %c0_108] : memref<4x1x8x16xf32, #tpu.memory_space<vmem>>, vector<1x1x8x16xf32>
    %126 = vector.shape_cast %125 : vector<1x1x8x16xf32> to vector<8x16xf32>
    %c3_109 = arith.constant 3 : index
    %c0_110 = arith.constant 0 : index
    %c0_111 = arith.constant 0 : index
    %c0_112 = arith.constant 0 : index
    %127 = vector.load %arg4[%c3_109, %c0_110, %c0_111, %c0_112] : memref<4x1x8x16xf32, #tpu.memory_space<vmem>>, vector<1x1x8x16xf32>
    %128 = vector.shape_cast %127 : vector<1x1x8x16xf32> to vector<8x16xf32>
    %cst_113 = arith.constant dense<0.000000e+00> : vector<16x16xf32>
    %129 = tpu.matmul %126, %124, %cst_113 {dimension_numbers = #tpu.dot_dimension_numbers<[0], [0], [1], [1], [0, 1, 1, 1], [], []>} : vector<8x16xf32>, vector<8x16xf32>, vector<16x16xf32> -> vector<16x16xf32>
    %cst_114 = arith.constant 0.353553385 : f32
    %130 = vector.broadcast %cst_114 : f32 to vector<16x16xf32>
    %131 = arith.mulf %129, %130 : vector<16x16xf32>
    %c3_115 = arith.constant 3 : index
    %c0_116 = arith.constant 0 : index
    %c0_117 = arith.constant 0 : index
    %132 = vector.load %arg6[%c3_115, %c0_116, %c0_117] : memref<4x1x16xf32, #tpu.memory_space<vmem>>, vector<1x1x16xf32>
    %133 = vector.shape_cast %132 : vector<1x1x16xf32> to vector<1x16xf32>
    %cst_118 = arith.constant dense<0xFF800000> : vector<16xf32>
    %134 = vector.multi_reduction <maximumf>, %131, %cst_118 [0] : vector<16x16xf32> to vector<16xf32>
    %135 = vector.shape_cast %134 : vector<16xf32> to vector<1x16xf32>
    %136 = arith.maximumf %133, %135 : vector<1x16xf32>
    %137 = arith.subf %133, %136 : vector<1x16xf32>
    %138 = math.exp %137 : vector<1x16xf32>
    %139 = vector.broadcast %136 : vector<1x16xf32> to vector<16x16xf32>
    %140 = arith.subf %131, %139 : vector<16x16xf32>
    %141 = math.exp %140 : vector<16x16xf32>
    %c3_119 = arith.constant 3 : index
    %c0_120 = arith.constant 0 : index
    %c0_121 = arith.constant 0 : index
    %142 = vector.load %arg7[%c3_119, %c0_120, %c0_121] : memref<4x1x16xf32, #tpu.memory_space<vmem>>, vector<1x1x16xf32>
    %143 = vector.shape_cast %142 : vector<1x1x16xf32> to vector<1x16xf32>
    %144 = arith.mulf %138, %143 : vector<1x16xf32>
    %cst_122 = arith.constant dense<0.000000e+00> : vector<16xf32>
    %145 = vector.multi_reduction <add>, %141, %cst_122 [0] : vector<16x16xf32> to vector<16xf32>
    %146 = vector.shape_cast %145 : vector<16xf32> to vector<1x16xf32>
    %147 = arith.addf %144, %146 : vector<1x16xf32>
    %c3_123 = arith.constant 3 : index
    %c0_124 = arith.constant 0 : index
    %c0_125 = arith.constant 0 : index
    %148 = vector.load %arg7[%c3_123, %c0_124, %c0_125] : memref<4x1x16xf32, #tpu.memory_space<vmem>>, vector<1x1x16xf32>
    %149 = vector.shape_cast %148 : vector<1x1x16xf32> to vector<1x16xf32>
    %150 = vector.shape_cast %147 : vector<1x16xf32> to vector<1x1x16xf32>
    tpu.vector_store %arg7[%c3_123, %c0_124, %c0_125], %150 {strides = array<i32>} : memref<4x1x16xf32, #tpu.memory_space<vmem>>, vector<1x1x16xf32>,
    %cst_126 = arith.constant dense<0.000000e+00> : vector<8x16xf32>
    %151 = tpu.matmul %128, %141, %cst_126 {dimension_numbers = #tpu.dot_dimension_numbers<[1], [0], [0], [1], [0, 0, 1, 1], [], []>} : vector<8x16xf32>, vector<16x16xf32>, vector<8x16xf32> -> vector<8x16xf32>
    %c3_127 = arith.constant 3 : index
    %c0_128 = arith.constant 0 : index
    %c0_129 = arith.constant 0 : index
    %152 = vector.load %arg8[%c3_127, %c0_128, %c0_129] : memref<4x8x16xf32, #tpu.memory_space<vmem>>, vector<1x8x16xf32>
    %153 = vector.shape_cast %152 : vector<1x8x16xf32> to vector<8x16xf32>
    %154 = vector.broadcast %138 : vector<1x16xf32> to vector<8x16xf32>
    %155 = arith.mulf %154, %153 : vector<8x16xf32>
    %156 = arith.addf %155, %151 : vector<8x16xf32>
    %c3_130 = arith.constant 3 : index
    %c0_131 = arith.constant 0 : index
    %c0_132 = arith.constant 0 : index
    %157 = vector.load %arg8[%c3_130, %c0_131, %c0_132] : memref<4x8x16xf32, #tpu.memory_space<vmem>>, vector<1x8x16xf32>
    %158 = vector.shape_cast %157 : vector<1x8x16xf32> to vector<8x16xf32>
    %159 = vector.shape_cast %156 : vector<8x16xf32> to vector<1x8x16xf32>
    tpu.vector_store %arg8[%c3_130, %c0_131, %c0_132], %159 {strides = array<i32>} : memref<4x8x16xf32, #tpu.memory_space<vmem>>, vector<1x8x16xf32>,
    %c3_133 = arith.constant 3 : index
    %c0_134 = arith.constant 0 : index
    %c0_135 = arith.constant 0 : index
    %160 = vector.load %arg6[%c3_133, %c0_134, %c0_135] : memref<4x1x16xf32, #tpu.memory_space<vmem>>, vector<1x1x16xf32>
    %161 = vector.shape_cast %160 : vector<1x1x16xf32> to vector<1x16xf32>
    %162 = vector.shape_cast %136 : vector<1x16xf32> to vector<1x1x16xf32>
    tpu.vector_store %arg6[%c3_133, %c0_134, %c0_135], %162 {strides = array<i32>} : memref<4x1x16xf32, #tpu.memory_space<vmem>>, vector<1x1x16xf32>,
    %c0_i32_136 = arith.constant 0 : i32
    %163 = arith.cmpi eq, %arg1, %c0_i32_136 : i32
    %164 = arith.extui %163 : i1 to i32
    %c0_i32_137 = arith.constant 0 : i32
    %165 = arith.cmpi ne, %164, %c0_i32_137 : i32
    scf.if %165 {
      %c0_138 = arith.constant 0 : index
      %c0_139 = arith.constant 0 : index
      %c0_140 = arith.constant 0 : index
      %166 = vector.load %arg7[%c0_138, %c0_139, %c0_140] : memref<4x1x16xf32, #tpu.memory_space<vmem>>, vector<4x1x16xf32>
      %167 = tpu.reciprocal %166 {approx = true} : vector<4x1x16xf32> -> vector<4x1x16xf32>
      %c0_141 = arith.constant 0 : index
      %c0_142 = arith.constant 0 : index
      %c0_143 = arith.constant 0 : index
      %168 = vector.load %arg8[%c0_141, %c0_142, %c0_143] : memref<4x8x16xf32, #tpu.memory_space<vmem>>, vector<4x8x16xf32>
      %169 = vector.broadcast %167 : vector<4x1x16xf32> to vector<4x8x16xf32>
      %170 = arith.mulf %168, %169 : vector<4x8x16xf32>
      %c0_144 = arith.constant 0 : index
      %c0_145 = arith.constant 0 : index
      %c0_146 = arith.constant 0 : index
      %171 = vector.load %arg5[%c0_144, %c0_145, %c0_146] : memref<4x8x16xf32, #tpu.memory_space<vmem>>, vector<4x8x16xf32>
      tpu.vector_store %arg5[%c0_144, %c0_145, %c0_146], %170 {strides = array<i32>} : memref<4x8x16xf32, #tpu.memory_space<vmem>>, vector<4x8x16xf32>,
    } else {
    }
    return
  }
  func.func @transform_0(%arg0: i32, %arg1: i32) -> (i32, i32, i32, i32) {
    %c0_i32 = arith.constant 0 : i32
    %c0_i32_0 = arith.constant 0 : i32
    %c0_i32_1 = arith.constant 0 : i32
    %c0_i32_2 = arith.constant 0 : i32
    return %arg0, %c0_i32, %c0_i32_0, %c0_i32_1 : i32, i32, i32, i32
  }
  func.func @transform_1(%arg0: i32, %arg1: i32) -> (i32, i32, i32, i32) {
    %c1_i32 = arith.constant 1 : i32
    %c0_i32 = arith.constant 0 : i32
    %c0_i32_0 = arith.constant 0 : i32
    return %arg0, %c1_i32, %c0_i32, %arg1 : i32, i32, i32, i32
  }
  func.func @transform_2(%arg0: i32, %arg1: i32) -> (i32, i32, i32, i32) {
    %c2_i32 = arith.constant 2 : i32
    %c0_i32 = arith.constant 0 : i32
    %c0_i32_0 = arith.constant 0 : i32
    return %arg0, %c2_i32, %c0_i32, %arg1 : i32, i32, i32, i32
  }
  func.func @transform_3(%arg0: i32, %arg1: i32) -> (i32, i32, i32) {
    %c0_i32 = arith.constant 0 : i32
    %c0_i32_0 = arith.constant 0 : i32
    %c0_i32_1 = arith.constant 0 : i32
    return %arg0, %c0_i32, %c0_i32_0 : i32, i32, i32
  }
}

</mosaic_0001>

<bundles_post_ra>
// kernel: tpu_custom_call.1
= control target key start
LH: loop header
LB: loop body
LE: loop exit
PB: predicated region body
PF: predicated region fallthrough
CT: control target
= control target key end

     0   :  { %8 = vsyncpa [#allocation6], 0  ;;  %s971_s0 = inlined_call_operand.hbm [shape: f32[4,3,8,16], index: 0, kind: input, shape index: {}]   ;;  %s972_s1 = inlined_call_operand.hbm [shape: f32[4,3,8,16], index: 1, kind: input, shape index: {}]   ;;  %s973_s2 = inlined_call_operand.hbm [shape: f32[4,3,8,16], index: 2, kind: input, shape index: {}]   ;;  %s974_s3 = inlined_call_operand.hbm [shape: f32[4,8,16], index: 3, kind: output, shape index: {}]  }
   0x1   :  { %9 = vsyncpa [#allocation9], 0 }
   0x2   :  { %10 = vsyncpa [#allocation7], 0  ;;  %s28_s14 = scalar_lea.hbm %s972_s1, 8  ;;  %s846_s16 = smov [#allocation8]  }
   0x3   :  { %s29_s15 = sshll.u32 %s28_s14, 4  ;;  %s31_s17 = sshll.u32 %s846_s16, 4  ;;  %s30_s15 = int_to_ptr.hbm [resolvable:$true] %s29_s15  ;;  %s32_s17 = int_to_ptr.vmem [resolvable:$true] %s31_s17 }
   0x4   :  { %s15_s20 = sshll.u32 %s971_s0, 4  ;;  %s847_s21 = smov 384   ;;  %s16_s20 = int_to_ptr.hbm [resolvable:$true] %s15_s20 }
   0x5   :  { %s848_s22 = smov 128   ;;  %s849_s23 = smov 8  }
   0x6   :  { %37 = dma.hbm_to_vmem [thread:$0]  %s30_s15, 512, %s32_s17, [#allocation9], %s847_s21, %s848_s22, %s849_s23  }
   0x7   :  { %s850_s24 = smov [#allocation5]   ;;  %s42_s27 = scalar_lea.hbm %s973_s2, 16 }
   0x8   :  { %s17_s25 = sshll.u32 %s850_s24, 4  ;;  %s43_s28 = sshll.u32 %s42_s27, 4  ;;  %s18_s25 = int_to_ptr.vmem [resolvable:$true] %s17_s25  ;;  %s44_s28 = int_to_ptr.hbm [resolvable:$true] %s43_s28 }
   0x9   :  { %23 = dma.hbm_to_vmem [thread:$0]  %s16_s20, 512, %s18_s25, [#allocation6], %s847_s21, %s848_s22, %s849_s23  }
   0xa   :  { %s851_s0 = smov [#allocation10]  }
   0xb   :  { %s45_s29 = sshll.u32 %s851_s0, 4  ;;  %s46_s29 = int_to_ptr.vmem [resolvable:$true] %s45_s29 }
   0xc   :  { %51 = dma.hbm_to_vmem [thread:$0]  %s44_s28, 512, %s46_s29, [#allocation9], %s847_s21, %s848_s22, %s849_s23  }
   0xd   :  { %840 = dma.done.wait [#allocation6], 512  }
   0xe   :  { %841 = vsyncadd [#allocation6], 4294966784 }
   0xf   :  { %842 = dma.done.wait [#allocation9], 1024  }
  0x10   :  { %843 = vsyncadd [#allocation9], 4294966272  ;;  %v83_v0 = vld [vmem:[#allocation8] sm:$0xff]  ;;  %v360_v1 = vld [vmem:[#allocation8 + $0x10] sm:$0xff]  ;;  %vm117_vm0 = vcmask 64512   ;;  %vm68_vm1 = vcmask 122880  }
  0x11   :  { %85 = vxpose.xlu0.b32.start.end [1/1] (short) (narrow) %v83_v0, 16  ;;  %363 = vxpose.xlu1.b32.start.end [1/1] (short) (narrow) %v360_v1, 16  ;;  %v221_v2 = vld [vmem:[#allocation8 + $0x8] sm:$0xff]  ;;  %v499_v3 = vld [vmem:[#allocation8 + $0x18] sm:$0xff]  ;;  %v82_v4 = vld [vmem:[#allocation5] sm:$0xff]  ;;  %v852_v15 = vmov -inf  }
  0x12   :  { %139 = vmatpush.msra.mxu0 %v82_v4  ;;  %702 = vmatpush.msra.mxu3 %v82_v4  ;;  %v219_v5 = vld [vmem:[#allocation5 + $0x8] sm:$0xff]  ;;  %v497_v6 = vld [vmem:[#allocation5 + $0x18] sm:$0xff]  ;;  %69 = vst.msk [vmem:[#allocation2] sm:$0x1] %vm68_vm1, %v852_v15  ;;  %vm77_vm2 = vcmask 130048   ;;  %v853_v16 = vmov 0.0  }
  0x13   :  { %277 = vmatpush.msra.mxu2 %v219_v5  ;;  %70 = vst.msk [vmem:[#allocation2 + $0x1] sm:$0x1] %vm68_vm1, %v852_v15  ;;  %s854_s2 = smov [#allocation11]   ;;  %s676_s6 = sshll.u32 %s974_s3, 4  ;;  %s677_s6 = int_to_ptr.hbm [resolvable:$true] %s676_s6 }
  0x14   :  { %555 = vmatpush.msrb.mxu0 %v497_v6  ;;  %71 = vst.msk [vmem:[#allocation2 + $0x2] sm:$0x1] %vm68_vm1, %v852_v15  ;;  %s674_s30 = sshll.u32 %s854_s2, 4  ;;  %s675_s30 = int_to_ptr.vmem [resolvable:$true] %s674_s30 }
  0x15   :  { %72 = vst.msk [vmem:[#allocation2 + $0x3] sm:$0x1] %vm68_vm1, %v852_v15 }
  0x16   :  { %73 = vst.msk [vmem:[#allocation3] sm:$0x1] %vm68_vm1, %v853_v16 }
  0x17   :  { %78 = vst.msk [vmem:[#allocation4] sm:$0xff] %vm77_vm2, %v853_v16 }
  0x18   :  { %74 = vst.msk [vmem:[#allocation3 + $0x1] sm:$0x1] %vm68_vm1, %v853_v16 }
  0x19   :  { %75 = vst.msk [vmem:[#allocation3 + $0x2] sm:$0x1] %vm68_vm1, %v853_v16  ;;  %v149_v38 = vld [vmem:[#allocation2] sm:$0x1] }
  0x1a   :  { %76 = vst.msk [vmem:[#allocation3 + $0x3] sm:$0x1] %vm68_vm1, %v853_v16 }
  0x1b   :  { %79 = vst.msk [vmem:[#allocation4 + $0x8] sm:$0xff] %vm77_vm2, %v853_v16 }
  0x1c   :  { %80 = vst.msk [vmem:[#allocation4 + $0x10] sm:$0xff] %vm77_vm2, %v853_v16  ;;  %v919_v58 = vld [vmem:[#allocation2 + $0x3] sm:$0x1] }
  0x1d   :  { %81 = vst.msk [vmem:[#allocation4 + $0x18] sm:$0xff] %vm77_vm2, %v853_v16 }
  0x21   :  { %224 = vxpose.xlu0.b32.start.end [1/1] (short) (narrow) %v221_v2, 16  ;;  %502 = vxpose.xlu1.b32.start.end [1/1] (short) (narrow) %v499_v3, 16  ;;  %v927_v2 = vld [vmem:[#allocation2 + $0x1] sm:$0x1] }
  0xb5   :  { %v101_v7 = vpop.trf.xlu0  ;;  %v890_v8 = vpop.trf.xlu1 }
  0xb6   :  { %690 = vmatmul.msk.f32.vlgmr.msra.gmra.mxu0 %vm117_vm0, %v101_v7 }
  0xbd   :  { %v102_v9 = vpop.trf.xlu0  ;;  %v893_v10 = vpop.trf.xlu1 }
  0xbe   :  { %691 = vmatmul.msk.f32.vlgmr.msra.gmra.mxu3 %vm117_vm0, %v102_v9 }
  0xc5   :  { %v240_v11 = vpop.trf.xlu0  ;;  %v518_v12 = vpop.trf.xlu1 }
  0xc6   :  { %693 = vmatmul.msk.f32.vlgmr.msra.gmra.mxu2 %vm117_vm0, %v240_v11  ;;  %699 = vmatmul.msk.f32.vlgmr.msrb.gmra.mxu0 %vm117_vm0, %v518_v12  ;;  %v84_v11 = vld [vmem:[#allocation10] sm:$0xff] }
  0xcd   :  { %v241_v13 = vpop.trf.xlu0  ;;  %v519_v14 = vpop.trf.xlu1 }
  0xce   :  { %694 = vmatmul.msk.f32.gmra.mxu2 %vm117_vm0, %v241_v13  ;;  %700 = vmatmul.msk.f32.gmra.mxu0 %vm117_vm0, %v519_v14 }
 0x133   :  { %v141_v17 = vpop.f32.mrf.mxu0 }
 0x134   :  { %v147_v18 = vmul.f32 0.35355338, %v141_v17  ;;  %v358_v17 = vld [vmem:[#allocation5 + $0x10] sm:$0xff] }
 0x136   :  { %v151_v22 = vsel %vm77_vm2, %v147_v18, -inf }
 0x141   :  { %v144_v19 = vpop.f32.mrf.mxu3 }
 0x142   :  { %v148_v20 = vmul.f32 0.35355338, %v144_v19 }
 0x143   :  { %v557_v21 = vpop.f32.mrf.mxu0 }
 0x144   :  { %v152_v23 = vsel %vm77_vm2, %v148_v20, -inf  ;;  %v563_v26 = vmul.f32 0.35355338, %v557_v21 }
 0x145   :  { %v153_v24 = vmax.f32 %v151_v22, %v152_v23 }
 0x146   :  { %v567_v31 = vsel %vm77_vm2, %v563_v26, -inf }
 0x147   :  { %v154_v25 = vrot.slane %v153_v24, 4 }
 0x149   :  { %v155_v27 = vmax.f32 %v153_v24, %v154_v25  ;;  %v279_v28 = vpop.f32.mrf.mxu2 }
 0x14a   :  { %v285_v34 = vmul.f32 0.35355338, %v279_v28 }
 0x14b   :  { %v156_v29 = vrot.slane %v155_v27, 2  ;;  %v560_v30 = vpop.f32.mrf.mxu0 }
 0x14c   :  { %v564_v32 = vmul.f32 0.35355338, %v560_v30  ;;  %v289_v42 = vsel %vm77_vm2, %v285_v34, -inf }
 0x14d   :  { %v157_v33 = vmax.f32 %v155_v27, %v156_v29 }
 0x14e   :  { %v568_v35 = vsel %vm77_vm2, %v564_v32, -inf }
 0x14f   :  { %v158_v36 = vrot.slane %v157_v33, 1  ;;  %v569_v37 = vmax.f32 %v567_v31, %v568_v35  ;;  %v501_v31 = vld [vmem:[#allocation10 + $0x18] sm:$0xff] }
 0x151   :  { %v159_v39 = vmax.f32 %v157_v33, %v158_v36  ;;  %v282_v40 = vpop.f32.mrf.mxu2  ;;  %v570_v41 = vrot.slane %v569_v37, 4 }
 0x152   :  { %v286_v43 = vmul.f32 0.35355338, %v282_v40 }
 0x153   :  { %v160_v44 = vmax.f32 %v149_v38, %v159_v39  ;;  %v571_v45 = vmax.f32 %v569_v37, %v570_v41 }
 0x154   :  { %v290_v46 = vsel %vm77_vm2, %v286_v43, -inf }
 0x155   :  { %v165_v47 = vperm.slane %v160_v44, 0  ;;  %217 = vst.msk [vmem:[#allocation2] sm:$0x1] %vm68_vm1, %v160_v44  ;;  %v291_v48 = vmax.f32 %v289_v42, %v290_v46  ;;  %v572_v49 = vrot.slane %v571_v45, 2  ;;  %v161_v63 = vsub.f32 %v149_v38, %v160_v44  ;;  %v223_v42 = vld [vmem:[#allocation10 + $0x8] sm:$0xff] }
 0x157   :  { %v167_v50 = vsub.f32 %v147_v18, %v165_v47  ;;  %v168_v51 = vsub.f32 %v148_v20, %v165_v47  ;;  %v292_v52 = vrot.slane %v291_v48, 4  ;;  %v573_v53 = vmax.f32 %v571_v45, %v572_v49 }
 0x158   :  { %v162_v12 = vmul.f32 1.442695, %v161_v63 }
 0x159   :  { %v171_v54 = vmul.f32 1.442695, %v168_v51  ;;  %v293_v55 = vmax.f32 %v291_v48, %v292_v52  ;;  %v574_v56 = vrot.slane %v573_v53, 1  ;;  %v169_v57 = vmul.f32 1.442695, %v167_v50 }
 0x15b   :  { %712 = vpow2.f32 %v171_v54  ;;  %v294_v59 = vrot.slane %v293_v55, 2  ;;  %v575_v60 = vmax.f32 %v573_v53, %v574_v56 }
 0x15c   :  { %714 = vpow2.f32 %v169_v57 }
 0x15d   :  { %v295_v61 = vmax.f32 %v293_v55, %v294_v59  ;;  %v922_v62 = vmax.f32 %v919_v58, %v575_v60  ;;  %v312_v59 = vld [vmem:[#allocation3 + $0x1] sm:$0x1] }
 0x15f   :  { %v296_v0 = vrot.slane %v295_v61, 1  ;;  %v581_v1 = vperm.slane %v922_v62, 0  ;;  %634 = vst.msk [vmem:[#allocation2 + $0x3] sm:$0x1] %vm68_vm1, %v922_v62  ;;  %v577_v55 = vsub.f32 %v919_v58, %v922_v62 }
 0x161   :  { %v713_v3 = vpop.eup %712  ;;  %v297_v4 = vmax.f32 %v295_v61, %v296_v0  ;;  %v583_v5 = vsub.f32 %v563_v26, %v581_v1  ;;  %v584_v6 = vsub.f32 %v564_v32, %v581_v1  ;;  %v578_v60 = vmul.f32 1.442695, %v577_v55 }
 0x162   :  { %v715_v7 = vpop.eup %714  ;;  %v176_v9 = vsel %vm77_vm2, %v713_v3, 0.0  ;;  %204 = vmatpush.msra.mxu1 %v713_v3 }
 0x163   :  { %v298_v13 = vmax.f32 %v927_v2, %v297_v4  ;;  %v585_v14 = vmul.f32 1.442695, %v583_v5  ;;  %v587_v15 = vmul.f32 1.442695, %v584_v6  ;;  %v175_v16 = vsel %vm77_vm2, %v715_v7, 0.0  ;;  %v210_v5 = vld [vmem:[#allocation4] sm:$0xff] }
 0x164   :  { %v177_v18 = vadd.f32 %v176_v9, %v175_v16  ;;  %205 = vmatpush.msra.mxu1 %v715_v7  ;;  %v590_v4 = vld [vmem:[#allocation3 + $0x3] sm:$0x1] }
 0x165   :  { %v303_v19 = vperm.slane %v298_v13, 0  ;;  %356 = vst.msk [vmem:[#allocation2 + $0x1] sm:$0x1] %vm68_vm1, %v298_v13  ;;  %716 = vpow2.f32 %v587_v15  ;;  %692 = vmatmul.msk.f32.vlgmr.msra.gmra.mxu1 %vm77_vm2, %v84_v11  ;;  %v299_v49 = vsub.f32 %v927_v2, %v298_v13  ;;  %v627_v16 = vld [vmem:[#allocation4 + $0x18] sm:$0xff] }
 0x166   :  { %v178_v20 = vrot.slane %v177_v18, 4  ;;  %416 = vmatpush.msrb.mxu1 %v358_v17  ;;  %718 = vpow2.f32 %v585_v14 }
 0x167   :  { %v305_v21 = vsub.f32 %v285_v34, %v303_v19  ;;  %v306_v22 = vsub.f32 %v286_v43, %v303_v19  ;;  %720 = vpow2.f32 %v162_v12  ;;  %v173_v34 = vld [vmem:[#allocation3] sm:$0x1]  ;;  %v300_v52 = vmul.f32 1.442695, %v299_v49 }
 0x168   :  { %v179_v23 = vadd.f32 %v178_v20, %v177_v18 }
 0x169   :  { %v309_v24 = vmul.f32 1.442695, %v306_v22  ;;  %v307_v25 = vmul.f32 1.442695, %v305_v21 }
 0x16a   :  { %v180_v26 = vrot.slane %v179_v23, 2 }
 0x16b   :  { %v717_v27 = vpop.eup %716  ;;  %722 = vpow2.f32 %v309_v24  ;;  %v349_v24 = vld [vmem:[#allocation4 + $0x8] sm:$0xff] }
 0x16c   :  { %v719_v28 = vpop.eup %718  ;;  %v593_v29 = vsel %vm77_vm2, %v717_v27, 0.0  ;;  %v181_v30 = vadd.f32 %v180_v26, %v179_v23  ;;  %620 = vmatpush.msrb.mxu2 %v717_v27  ;;  %724 = vpow2.f32 %v307_v25 }
 0x16d   :  { %v721_v32 = vpop.eup %720  ;;  %696 = vmatmul.msk.f32.vlgmr.msrb.gmra.mxu1 %vm117_vm0, %v890_v8  ;;  %v592_v33 = vsel %vm77_vm2, %v719_v28, 0.0  ;;  %726 = vpow2.f32 %v300_v52 }
 0x16e   :  { %v182_v35 = vrot.slane %v181_v30, 1  ;;  %v594_v36 = vadd.f32 %v593_v29, %v592_v33  ;;  %621 = vmatpush.msrb.mxu2 %v719_v28  ;;  %v174_v38 = vmul.f32 %v721_v32, %v173_v34  ;;  %728 = vpow2.f32 %v578_v60  ;;  %v362_v60 = vld [vmem:[#allocation10 + $0x10] sm:$0xff] }
 0x16f   :  { %701 = vmatmul.msk.f32.vlgmr.msrb.gmra.mxu2 %vm77_vm2, %v501_v31  ;;  %v212_v3 = vperm.slane %v721_v32, 0 }
 0x170   :  { %v183_v37 = vadd.f32 %v182_v35, %v181_v30  ;;  %v595_v48 = vrot.slane %v594_v36, 4 }
 0x171   :  { %v723_v39 = vpop.eup %722  ;;  %v214_v58 = vmul.f32 %v212_v3, %v210_v5  ;;  %v451_v5 = vld [vmem:[#allocation3 + $0x2] sm:$0x1] }
 0x172   :  { %v725_v40 = vpop.eup %724  ;;  %v315_v41 = vsel %vm77_vm2, %v723_v39, 0.0  ;;  %342 = vmatpush.msrb.mxu3 %v723_v39  ;;  %v184_v43 = vadd.f32 %v183_v37, %v174_v38  ;;  %v596_v51 = vadd.f32 %v595_v48, %v594_v36 }
 0x173   :  { %v314_v44 = vsel %vm77_vm2, %v725_v40, 0.0 }
 0x174   :  { %v316_v8 = vadd.f32 %v315_v41, %v314_v44  ;;  %343 = vmatpush.msrb.mxu3 %v725_v40  ;;  %186 = vst.msk [vmem:[#allocation3] sm:$0x1] %vm68_vm1, %v184_v43  ;;  %v597_v54 = vrot.slane %v596_v51, 2 }
 0x175   :  { %697 = vmatmul.msk.f32.gmra.mxu1 %vm117_vm0, %v893_v10  ;;  %695 = vmatmul.msk.f32.vlgmr.msrb.gmra.mxu3 %vm77_vm2, %v223_v42  ;;  %v727_v10 = vpop.eup %726 }
 0x176   :  { %v317_v45 = vrot.slane %v316_v8, 4  ;;  %v598_v57 = vadd.f32 %v597_v54, %v596_v51  ;;  %v313_v61 = vmul.f32 %v727_v10, %v312_v59  ;;  %v729_v2 = vpop.eup %728  ;;  %v351_v22 = vperm.slane %v727_v10, 0 }
 0x177   :  { %v591_v6 = vmul.f32 %v729_v2, %v590_v4  ;;  %v629_v14 = vperm.slane %v729_v2, 0 }
 0x178   :  { %v318_v46 = vadd.f32 %v317_v45, %v316_v8  ;;  %v599_v63 = vrot.slane %v598_v57, 1  ;;  %v353_v31 = vmul.f32 %v351_v22, %v349_v24  ;;  %v427_v45 = vld [vmem:[#allocation2 + $0x2] sm:$0x1] }
 0x179   :  { %v631_v20 = vmul.f32 %v629_v14, %v627_v16 }
 0x17a   :  { %v319_v47 = vrot.slane %v318_v46, 2  ;;  %v600_v1 = vadd.f32 %v599_v63, %v598_v57 }
 0x17b   :  { %v638_v7 = vld [vmem:[#allocation3] sm:$0x1] }
 0x17c   :  { %v320_v50 = vadd.f32 %v319_v47, %v318_v46  ;;  %v601_v9 = vadd.f32 %v600_v1, %v591_v6  ;;  %730 = vrcp.f32 %v638_v7 }
 0x17e   :  { %v321_v53 = vrot.slane %v320_v50, 1  ;;  %602 = vst.msk [vmem:[#allocation3 + $0x3] sm:$0x1] %vm68_vm1, %v601_v9 }
 0x180   :  { %v322_v56 = vadd.f32 %v321_v53, %v320_v50 }
 0x182   :  { %v323_v0 = vadd.f32 %v322_v56, %v313_v61  ;;  %v731_v12 = vpop.eup %730 }
 0x183   :  { %v654_v15 = vperm.slane %v731_v12, 0 }
 0x184   :  { %324 = vst.msk [vmem:[#allocation3 + $0x1] sm:$0x1] %vm68_vm1, %v323_v0 }
 0x185   :  { %v641_v18 = vld [vmem:[#allocation3 + $0x3] sm:$0x1] }
 0x186   :  { %732 = vrcp.f32 %v641_v18 }
 0x18b   :  { %v639_v28 = vld [vmem:[#allocation3 + $0x1] sm:$0x1] }
 0x18c   :  { %v733_v32 = vpop.eup %732  ;;  %734 = vrcp.f32 %v639_v28 }
 0x18d   :  { %v657_v37 = vperm.slane %v733_v32, 0 }
 0x192   :  { %v735_v39 = vpop.eup %734 }
 0x193   :  { %v655_v44 = vperm.slane %v735_v39, 0 }
 0x1e2   :  { %v207_v62 = vpop.f32.mrf.mxu1 }
 0x1e3   :  { %v215_v11 = vadd.f32 %v214_v58, %v207_v62 }
 0x1e5   :  { %216 = vst.msk [vmem:[#allocation4] sm:$0xff] %vm77_vm2, %v215_v11  ;;  %v488_v11 = vld [vmem:[#allocation4 + $0x10] sm:$0xff] }
 0x1ea   :  { %v418_v13 = vpop.f32.mrf.mxu1 }
 0x1eb   :  { %v424_v21 = vmul.f32 0.35355338, %v418_v13 }
 0x1ec   :  { %v646_v17 = vld [vmem:[#allocation4] sm:$0xff] }
 0x1ed   :  { %v662_v19 = vmul.f32 %v654_v15, %v646_v17  ;;  %v428_v29 = vsel %vm77_vm2, %v424_v21, -inf }
 0x1ef   :  { %666 = vst.msk [vmem:[#allocation11] sm:$0xff] %vm77_vm2, %v662_v19 }
 0x1f2   :  { %v421_v23 = vpop.f32.mrf.mxu1  ;;  %v623_v25 = vpop.f32.mrf.mxu2 }
 0x1f3   :  { %v425_v26 = vmul.f32 0.35355338, %v421_v23  ;;  %v632_v27 = vadd.f32 %v631_v20, %v623_v25 }
 0x1f5   :  { %v429_v30 = vsel %vm77_vm2, %v425_v26, -inf  ;;  %633 = vst.msk [vmem:[#allocation4 + $0x18] sm:$0xff] %vm77_vm2, %v632_v27 }
 0x1f6   :  { %v430_v33 = vmax.f32 %v428_v29, %v429_v30 }
 0x1f8   :  { %v431_v34 = vrot.slane %v430_v33, 4  ;;  %v345_v35 = vpop.f32.mrf.mxu3 }
 0x1f9   :  { %v354_v36 = vadd.f32 %v353_v31, %v345_v35 }
 0x1fa   :  { %v432_v38 = vmax.f32 %v430_v33, %v431_v34 }
 0x1fb   :  { %355 = vst.msk [vmem:[#allocation4 + $0x8] sm:$0xff] %vm77_vm2, %v354_v36 }
 0x1fc   :  { %v433_v40 = vrot.slane %v432_v38, 2  ;;  %v649_v41 = vld [vmem:[#allocation4 + $0x18] sm:$0xff] }
 0x1fd   :  { %v665_v42 = vmul.f32 %v657_v37, %v649_v41 }
 0x1fe   :  { %v434_v43 = vmax.f32 %v432_v38, %v433_v40 }
 0x1ff   :  { %669 = vst.msk [vmem:[#allocation11 + $0x18] sm:$0xff] %vm77_vm2, %v665_v42 }
 0x200   :  { %v435_v8 = vrot.slane %v434_v43, 1 }
 0x202   :  { %v436_v46 = vmax.f32 %v434_v43, %v435_v8  ;;  %v647_v47 = vld [vmem:[#allocation4 + $0x8] sm:$0xff] }
 0x203   :  { %v663_v48 = vmul.f32 %v655_v44, %v647_v47 }
 0x204   :  { %v437_v49 = vmax.f32 %v427_v45, %v436_v46 }
 0x205   :  { %667 = vst.msk [vmem:[#allocation11 + $0x8] sm:$0xff] %vm77_vm2, %v663_v48 }
 0x206   :  { %v442_v50 = vperm.slane %v437_v49, 0  ;;  %495 = vst.msk [vmem:[#allocation2 + $0x2] sm:$0x1] %vm68_vm1, %v437_v49  ;;  %v438_v55 = vsub.f32 %v427_v45, %v437_v49 }
 0x208   :  { %v444_v51 = vsub.f32 %v424_v21, %v442_v50  ;;  %v445_v52 = vsub.f32 %v425_v26, %v442_v50  ;;  %v439_v61 = vmul.f32 1.442695, %v438_v55 }
 0x20a   :  { %v446_v53 = vmul.f32 1.442695, %v444_v51  ;;  %v448_v54 = vmul.f32 1.442695, %v445_v52 }
 0x20c   :  { %736 = vpow2.f32 %v446_v53 }
 0x20d   :  { %738 = vpow2.f32 %v448_v54 }
 0x20e   :  { %740 = vpow2.f32 %v439_v61 }
 0x212   :  { %v737_v56 = vpop.eup %736 }
 0x213   :  { %v739_v57 = vpop.eup %738  ;;  %v453_v10 = vsel %vm77_vm2, %v737_v56, 0.0 }
 0x214   :  { %v454_v59 = vsel %vm77_vm2, %v739_v57, 0.0  ;;  %481 = vmatpush.msra.mxu3 %v739_v57  ;;  %v741_v4 = vpop.eup %740 }
 0x215   :  { %v455_v63 = vadd.f32 %v454_v59, %v453_v10  ;;  %v452_v9 = vmul.f32 %v741_v4, %v451_v5  ;;  %v490_v62 = vperm.slane %v741_v4, 0 }
 0x216   :  { %482 = vmatpush.msra.mxu3 %v737_v56 }
 0x217   :  { %v456_v0 = vrot.slane %v455_v63, 4  ;;  %698 = vmatmul.msk.f32.vlgmr.msra.gmra.mxu3 %vm77_vm2, %v362_v60  ;;  %v492_v13 = vmul.f32 %v490_v62, %v488_v11 }
 0x219   :  { %v457_v1 = vadd.f32 %v456_v0, %v455_v63 }
 0x21b   :  { %v458_v2 = vrot.slane %v457_v1, 2 }
 0x21d   :  { %v459_v3 = vadd.f32 %v458_v2, %v457_v1 }
 0x21f   :  { %v460_v6 = vrot.slane %v459_v3, 1 }
 0x221   :  { %v461_v7 = vadd.f32 %v460_v6, %v459_v3 }
 0x223   :  { %v462_v58 = vadd.f32 %v461_v7, %v452_v9 }
 0x225   :  { %463 = vst.msk [vmem:[#allocation3 + $0x2] sm:$0x1] %vm68_vm1, %v462_v58 }
 0x22c   :  { %v640_v12 = vld [vmem:[#allocation3 + $0x2] sm:$0x1] }
 0x22d   :  { %742 = vrcp.f32 %v640_v12 }
 0x233   :  { %v743_v16 = vpop.eup %742 }
 0x234   :  { %v656_v17 = vperm.slane %v743_v16, 0 }
 0x29a   :  { %v484_v14 = vpop.f32.mrf.mxu3 }
 0x29b   :  { %v493_v15 = vadd.f32 %v492_v13, %v484_v14 }
 0x29d   :  { %494 = vst.msk [vmem:[#allocation4 + $0x10] sm:$0xff] %vm77_vm2, %v493_v15 }
 0x2a4   :  { %v648_v18 = vld [vmem:[#allocation4 + $0x10] sm:$0xff] }
 0x2a5   :  { %v664_v19 = vmul.f32 %v656_v17, %v648_v18 }
 0x2a7   :  { %668 = vst.msk [vmem:[#allocation11 + $0x10] sm:$0xff] %vm77_vm2, %v664_v19 }
 0x2a8   :  { %682 = dma.vmem_to_hbm [thread:$0]  %s675_s30, 512, %s677_s6, [#allocation7], %s848_s22, %s848_s22, %s849_s23  }
 0x2a9   :  { %844 = dma.done.wait [#allocation7], 512  }
 0x2aa   :  { %845 = vsyncadd [#allocation7], 4294966784 }
 0x2ab   :  { %687 = vsyncpa [#allocation6], 1 }
 0x2ac   :  { %688 = vsyncpa [#allocation9], 1 }
 0x2ad   :  { %689 = vsyncpa [#allocation7], 1 }

</bundles_post_ra>
